<compile_context>
chip_gen: v7x
topology: tpu7x:2x2x1
jax: 0.10.0
libtpu: 0.0.40
codegen_flags: <defaults>
</compile_context>

<pallas_src>
import jax
import jax.numpy as jnp
from jax.experimental import pallas as pl
from jax.experimental.pallas import tpu as pltpu


def _label_mlp_kernel(x_ref, w1_ref, b1_ref, w2_ref, b2_ref, out_ref):
    """Two-layer MLP with LeakyReLU(0.01) on already-gathered label logits.

    x_ref   : (M, S)  f32   gathered label distribution (M = 1 for this module)
    w1_ref  : (S, H)  f32
    b1_ref  : (1, H)  f32
    w2_ref  : (H, S)  f32
    b2_ref  : (1, S)  f32
    out_ref : (M, S)  f32
    """
    x = x_ref[...]                                                        # (M, S)

    # Linear(input_size -> hidden) + LeakyReLU (PyTorch default slope 0.01).
    h = jnp.dot(x, w1_ref[...], preferred_element_type=jnp.float32) + b1_ref[...]
    h = jnp.where(h > 0, h, 0.01 * h)

    # Linear(hidden -> input_size).
    y = jnp.dot(h, w2_ref[...], preferred_element_type=jnp.float32) + b2_ref[...]
    out_ref[...] = y.astype(out_ref.dtype)


@jax.jit
def label_mask_domain_forward(inp, tokens, w1, b1, w2, b2):
    """Full forward of labelMaskDomain.

    The S-element flat gather (torch.take) is a tiny dynamic gather done in the
    wrapper; only the (1, S) gathered vector and the weights enter the kernel,
    so no N-sized HBM->VMEM DMA ever happens.
    """
    flat = inp.reshape(-1)                                   # row-major flatten (torch.take)
    x = jnp.take(flat, tokens).astype(jnp.float32).reshape(1, -1)   # (1, S)
    s = x.shape[1]

    vmem = pl.BlockSpec(memory_space=pltpu.MemorySpace.VMEM)
    out = pl.pallas_call(
        _label_mlp_kernel,
        out_shape=jax.ShapeDtypeStruct((1, s), jnp.float32),
        in_specs=[vmem] * 5,
        out_specs=vmem,
        # Single grid point: all operands are a few KiB, far under every
        # generation's scoped-VMEM default, so no tiling / vmem_limit override.
    )(x, w1, b1.reshape(1, -1), w2, b2.reshape(1, -1))
    return out[0]                                            # (input_size,)


if __name__ == "__main__":
    # Small shapes consistent with the module's forward.
    batch, channels, spatial = 2, 4, 16
    input_size = 8           # len(labelDomains[domain]) == inut_size
    hidden = 32              # hiddenDimension (kept small for the synthetic test)
    n_flat = batch * channels * spatial * spatial            # 2048

    key = jax.random.PRNGKey(0)
    k_in, k_tok, k_w1, k_b1, k_w2, k_b2 = jax.random.split(key, 6)

    x = jax.random.normal(k_in, (batch, channels, spatial, spatial), dtype=jnp.float32)
    tokens = jax.random.choice(
        k_tok, n_flat, shape=(input_size,), replace=False
    ).astype(jnp.int32)

    # Deterministic synthetic parameters, stored as (in, out).
    w1 = jax.random.normal(k_w1, (input_size, hidden), dtype=jnp.float32) * 0.1
    b1 = jax.random.normal(k_b1, (hidden,), dtype=jnp.float32) * 0.01
    w2 = jax.random.normal(k_w2, (hidden, input_size), dtype=jnp.float32) * 0.1
    b2 = jax.random.normal(k_b2, (input_size,), dtype=jnp.float32) * 0.01

    out = label_mask_domain_forward(x, tokens, w1, b1, w2, b2)
    out = jax.block_until_ready(out)

    # Pure-JAX reference (same math as the PyTorch module).
    x_gath = jnp.take(x.reshape(-1), tokens)
    h_ref = x_gath @ w1 + b1
    h_ref = jnp.where(h_ref > 0, h_ref, 0.01 * h_ref)
    ref = h_ref @ w2 + b2

    assert out.shape == (input_size,)
    assert jnp.allclose(out, ref, atol=1e-5, rtol=1e-5)

    print("KERNEL_OK")
</pallas_src>

<mosaic_0001>
module attributes {stable_mosaic.version = 11 : i64} {
  func.func @_label_mlp_kernel(%arg0: memref<1x8xf32, #tpu.memory_space<vmem>>, %arg1: memref<8x32xf32, #tpu.memory_space<vmem>>, %arg2: memref<1x32xf32, #tpu.memory_space<vmem>>, %arg3: memref<32x8xf32, #tpu.memory_space<vmem>>, %arg4: memref<1x8xf32, #tpu.memory_space<vmem>>, %arg5: memref<1x8xf32, #tpu.memory_space<vmem>>) attributes {dimension_semantics = [], scalar_prefetch = 0 : i64, scratch_operands = 0 : i64, tpu.core_type = #tpu.core_type<tc>} {
    %c0 = arith.constant 0 : index
    %c0_0 = arith.constant 0 : index
    %0 = vector.load %arg0[%c0, %c0_0] : memref<1x8xf32, #tpu.memory_space<vmem>>, vector<1x8xf32>
    %c0_1 = arith.constant 0 : index
    %c0_2 = arith.constant 0 : index
    %1 = vector.load %arg1[%c0_1, %c0_2] : memref<8x32xf32, #tpu.memory_space<vmem>>, vector<8x32xf32>
    %cst = arith.constant dense<0.000000e+00> : vector<1x32xf32>
    %2 = tpu.matmul %0, %1, %cst {dimension_numbers = #tpu.dot_dimension_numbers<[1], [0], [0], [1], [0, 0, 1, 1], [], []>} : vector<1x8xf32>, vector<8x32xf32>, vector<1x32xf32> -> vector<1x32xf32>
    %c0_3 = arith.constant 0 : index
    %c0_4 = arith.constant 0 : index
    %3 = vector.load %arg2[%c0_3, %c0_4] : memref<1x32xf32, #tpu.memory_space<vmem>>, vector<1x32xf32>
    %4 = arith.addf %2, %3 : vector<1x32xf32>
    %cst_5 = arith.constant 0.000000e+00 : f32
    %5 = vector.broadcast %cst_5 : f32 to vector<1x32xf32>
    %6 = arith.cmpf ogt, %4, %5 : vector<1x32xf32>
    %cst_6 = arith.constant 0.00999999977 : f32
    %7 = vector.broadcast %cst_6 : f32 to vector<1x32xf32>
    %8 = arith.mulf %7, %4 : vector<1x32xf32>
    %9 = arith.select %6, %4, %8 : vector<1x32xi1>, vector<1x32xf32>
    %c0_7 = arith.constant 0 : index
    %c0_8 = arith.constant 0 : index
    %10 = vector.load %arg3[%c0_7, %c0_8] : memref<32x8xf32, #tpu.memory_space<vmem>>, vector<32x8xf32>
    %cst_9 = arith.constant dense<0.000000e+00> : vector<1x8xf32>
    %11 = tpu.matmul %9, %10, %cst_9 {dimension_numbers = #tpu.dot_dimension_numbers<[1], [0], [0], [1], [0, 0, 1, 1], [], []>} : vector<1x32xf32>, vector<32x8xf32>, vector<1x8xf32> -> vector<1x8xf32>
    %c0_10 = arith.constant 0 : index
    %c0_11 = arith.constant 0 : index
    %12 = vector.load %arg4[%c0_10, %c0_11] : memref<1x8xf32, #tpu.memory_space<vmem>>, vector<1x8xf32>
    %13 = arith.addf %11, %12 : vector<1x8xf32>
    %c0_12 = arith.constant 0 : index
    %c0_13 = arith.constant 0 : index
    %14 = vector.load %arg5[%c0_12, %c0_13] : memref<1x8xf32, #tpu.memory_space<vmem>>, vector<1x8xf32>
    tpu.vector_store %arg5[%c0_12, %c0_13], %13 {strides = array<i32>} : memref<1x8xf32, #tpu.memory_space<vmem>>, vector<1x8xf32>,
    return
  }
}

</mosaic_0001>

<bundles_post_ra>
// kernel: label_mask_domain_forward.1
= control target key start
LH: loop header
LB: loop body
LE: loop exit
PB: predicated region body
PF: predicated region fallthrough
CT: control target
= control target key end

     0   :  { %vm24_vm0 = vcmask 64512   ;;  %v255_v2 = vmov 0.0   ;;  %vm256_vm1 = vmmov 0   ;;  %v257_v5 = vmov 0.0|0.0   ;;  %s325_s0 = inlined_call_operand.vmem [shape: f32[1,8], index: 0, kind: input, shape index: {}]   ;;  %s326_s1 = inlined_call_operand.vmem [shape: f32[8,32], index: 1, kind: input, shape index: {}]   ;;  %s327_s2 = inlined_call_operand.vmem [shape: f32[1,32], index: 2, kind: input, shape index: {}]   ;;  %s328_s3 = inlined_call_operand.vmem [shape: f32[32,8], index: 3, kind: input, shape index: {}]   ;;  %s329_s4 = inlined_call_operand.vmem [shape: f32[1,8], index: 4, kind: input, shape index: {}]   ;;  %s330_s5 = inlined_call_operand.hbm [shape: f32[1,8], index: 5, kind: output, shape index: {}]  }
   0x1   :  { %v22_v0 = vld [vmem:[%s326_s1] sm:$0xff]  ;;  %205 = vmatprep.subr.mxu0 %v255_v2  ;;  %207 = vmatprep.mubr.msk.f32.mxu0 %vm256_vm1, %v255_v2  ;;  %v102_v4 = vld [vmem:[%s328_s3 + $0x8] sm:$0xff] }
   0x2   :  { %v21_v1 = vld [vmem:[%s325_s0] sm:$0x1]  ;;  %206 = vmatpush3.msra.mxu0 %v22_v0  ;;  %221 = vmatprep.subr.bf16.mxu1 %v257_v5 }
   0x3   :  { %v101_v3 = vld [vmem:[%s328_s3] sm:$0xff] }
   0x4   :  { %v222_v6 = vpack.c.bf16 %v102_v4, %v101_v3 }
   0x5   :  { %10 = vsyncpa [#allocation3], 0  ;;  %208 = vmatmul.mubr.msk.f32.vlgmr.msra.gmra.mrb[0].mxu0 %vm24_vm0, %v21_v1  ;;  %218 = vmatprep.mubr.msk.f32.mxu1 %vm256_vm1, %v255_v2  ;;  %v103_v7 = vld [vmem:[%s328_s3 + $0x10] sm:$0xff]  ;;  %v104_v8 = vld [vmem:[%s328_s3 + $0x18] sm:$0xff]  ;;  %vm106_vm3 = vcmask 261120   ;;  %s258_s7 = smov [#allocation2]  }
   0x6   :  { %223 = vmatpush3.bf16.msra.mxu1 %v222_v6  ;;  %v225_v9 = vpack.c.bf16 %v104_v8, %v103_v7  ;;  %v23_v10 = vld [vmem:[%s327_s2] sm:$0x1]  ;;  %s188_s3 = sshll.u32 %s258_s7, 4  ;;  %vm180_vm4 = vcmask 57344   ;;  %s189_s3 = int_to_ptr.vmem [resolvable:$true] %s188_s3 }
   0x7   :  { %224 = vmatprep.subr.bf16.mxu1 %v257_v5  ;;  %v105_v16 = vld [vmem:[%s329_s4] sm:$0x1]  ;;  %s231_s2 = scalar_lea.vmem %s189_s3, 16  ;;  %s235_s8 = scalar_lea.vmem %s189_s3, 32 }
   0x8   :  { %p232_p0 = scmp.ne.s32.totalorder %s189_s3, %s231_s2  ;;  %p236_p1 = scmp.lt.s32.totalorder %s189_s3, %s189_s3 }
   0x9   :  { %p237_p2 = scmp.lt.s32.totalorder %s235_s8, %s231_s2 }
   0xa   :  { %226 = vmatpush3.bf16.msra.mxu1 %v225_v9 }
   0xb   :  { %p238_p3 = por %p237_p2, %p236_p1 }
   0xd   :  { %p239_p4 = pnand %p238_p3, %p232_p0 }
  0xd8   :  { %v94_v11 = vpop.f32.mrb[0].mxu0 }
  0xd9   :  { %v95_v12 = vadd.f32 %v94_v11, %v23_v10  ;;  %v209_v13 = vpop.f32.mrb[1].mxu0 }
  0xdb   :  { %vm98_vm2 = vcmp.gt.f32.partialorder %v95_v12, 0.0  ;;  %v99_v14 = vmul.f32 0.01, %v95_v12 }
  0xdd   :  { %v100_v15 = vsel %vm98_vm2, %v95_v12, %v99_v14 }
  0xde   :  { %219 = vmatmul.mubr.msk.f32.vlgmr.msra.gmra.mrb[0].mxu1 %vm106_vm3, %v100_v15 }
 0x1b1   :  { %v176_v17 = vpop.f32.mrb[0].mxu1 }
 0x1b2   :  { %v177_v18 = vadd.f32 %v176_v17, %v105_v16  ;;  %v220_v19 = vpop.f32.mrb[1].mxu1 }
 0x1b4   :  { %181 = vst.msk [vmem:[#allocation2] sm:$0x1] %vm180_vm4, %v177_v18 }
 0x1b5   :  { %242 = shalt.err (!%p239_p4)
}
 0x1b6   :  { %s243_s4 = scalar_lea.hbm %s330_s5, 16 }
 0x1b7   :  { %p244_p5 = scmp.ne.s32.totalorder %s330_s5, %s243_s4  ;;  %p247_p6 = scmp.lt.u32.totalorder %s243_s4, %s330_s5 }
 0x1b9   :  { %p249_p7 = pnand %p247_p6, %p244_p5 }
 0x1bb   :  { %252 = shalt.err (!%p249_p7)
}
 0x1bc   :  { %191 = dma.vmem_to_hbm [thread:$0]  %s189_s3, 16, %s330_s5, [#allocation3]  }
 0x1bd   :  { %253 = dma.done.wait [#allocation3], 16  }
 0x1be   :  { %254 = vsyncadd [#allocation3], 4294967280 }
 0x1bf   :  { %195 = vsyncpa [#allocation3], 1 }

</bundles_post_ra>
